<compile_context>
chip_gen: v6e
topology: v6e:2x2x1
jax: 0.10.0
libtpu: 0.0.40
codegen_flags: <defaults>
</compile_context>

<pallas_src>
from functools import partial

import numpy as np
import jax
import jax.numpy as jnp
from jax import lax
from jax.experimental import pallas as pl
from jax.experimental.pallas import tpu as pltpu


# ----------------------------------------------------------------------------
# Pallas kernels
# ----------------------------------------------------------------------------
def _iou_decode_kernel(truths_ref, pl_ref, iou_ref, *, v0, v1, a_pad):
    """truths_ref: (A_pad, 4) corner boxes for one image.
       pl_ref:     (8, TN)  rows 0-3 = priors.T (cx,cy,w,h), rows 4-7 = loc.T.
       iou_ref:    (2*A_pad, TN) rows [0:A_pad]  = IoU(truths, point_form(priors)),
                                 rows [A_pad:]   = IoU(truths, point_form(decode(loc)))."""
    pcx = pl_ref[0:1, :]
    pcy = pl_ref[1:2, :]
    pw = pl_ref[2:3, :]
    ph = pl_ref[3:4, :]
    lx = pl_ref[4:5, :]
    ly = pl_ref[5:6, :]
    lw = pl_ref[6:7, :]
    lh = pl_ref[7:8, :]

    # point_form(priors)
    ax1 = pcx - 0.5 * pw
    ay1 = pcy - 0.5 * ph
    ax2 = pcx + 0.5 * pw
    ay2 = pcy + 0.5 * ph

    # decode(loc, priors, variance) -> center form, then point_form
    dcx = pcx + lx * v0 * pw
    dcy = pcy + ly * v0 * ph
    dw = pw * jnp.exp(lw * v1)
    dh = ph * jnp.exp(lh * v1)
    dx1 = dcx - 0.5 * dw
    dy1 = dcy - 0.5 * dh
    dx2 = dcx + 0.5 * dw
    dy2 = dcy + 0.5 * dh

    tx1 = truths_ref[:, 0:1]
    ty1 = truths_ref[:, 1:2]
    tx2 = truths_ref[:, 2:3]
    ty2 = truths_ref[:, 3:4]
    area_t = (tx2 - tx1) * (ty2 - ty1)  # (A_pad, 1)

    def pairwise_iou(bx1, by1, bx2, by2):
        ix = jnp.maximum(jnp.minimum(tx2, bx2) - jnp.maximum(tx1, bx1), 0.0)
        iy = jnp.maximum(jnp.minimum(ty2, by2) - jnp.maximum(ty1, by1), 0.0)
        inter = ix * iy                         # (A_pad, TN)
        area_b = (bx2 - bx1) * (by2 - by1)      # (1, TN)
        union = area_t + area_b - inter
        # TODO(synk): pl.reciprocal(approx=True) would move the divide to the EUP
        # slot, but its ~1e-3 error can flip matches near the 0.35/0.40 IoU
        # thresholds, so we keep the exact divide.
        return inter / union

    iou_ref[0:a_pad, :] = pairwise_iou(ax1, ay1, ax2, ay2)
    iou_ref[a_pad:2 * a_pad, :] = pairwise_iou(dx1, dy1, dx2, dy2)


def _smooth_l1_sum_kernel(cnt_ref, p_ref, t_ref, o_ref):
    """Lane-dense masked smooth-L1 sum over a flattened (rows, 128) slab.
       cnt_ref (SMEM, scalar prefetch) holds the number of valid elements."""
    rows, cols = p_ref.shape
    row_i = lax.broadcasted_iota(jnp.int32, (rows, cols), 0)
    col_i = lax.broadcasted_iota(jnp.int32, (rows, cols), 1)
    flat_i = row_i * cols + col_i
    mask = (flat_i < cnt_ref[0]).astype(jnp.float32)
    d = jnp.abs(p_ref[...] - t_ref[...])
    loss = jnp.where(d < 1.0, 0.5 * d * d, d - 0.5)
    o_ref[...] = jnp.sum(loss * mask, keepdims=True)


def _ce_sum_kernel(cnt_ref, x_ref, lab_ref, o_ref):
    """Lane-dense masked cross-entropy sum.
       x_ref: (C, R_pad) logits with the sample axis on lanes.
       lab_ref: (1, R_pad) int32 class labels.
       cnt_ref: SMEM scalar (number of valid samples)."""
    c, r = x_ref.shape
    x = x_ref[...]
    lab = lab_ref[...]
    cls_i = lax.broadcasted_iota(jnp.int32, (c, r), 0)
    onehot = (cls_i == lab).astype(jnp.float32)
    xmax = jnp.max(x, axis=0, keepdims=True)
    lse = jnp.log(jnp.sum(jnp.exp(x - xmax), axis=0, keepdims=True)) + xmax
    picked = jnp.sum(x * onehot, axis=0, keepdims=True)
    col_i = lax.broadcasted_iota(jnp.int32, (1, r), 1)
    mask = (col_i < cnt_ref[0]).astype(jnp.float32)
    o_ref[...] = jnp.sum((lse - picked) * mask, keepdims=True)


# ----------------------------------------------------------------------------
# Pallas wrappers
# ----------------------------------------------------------------------------
def _choose_anchor_tile(n, max_tile=2048):
    """Pad anchor count to a multiple of 128 and pick a lane tile width.
       TN <= 2048 keeps the double-buffered block far below v7x's 32 MiB
       scoped-VMEM default while still reaching the HBM roofline on v5e/v6e."""
    n128 = ((n + 127) // 128) * 128
    if n128 <= max_tile:
        return n128, n128
    n_pad = ((n128 + max_tile - 1) // max_tile) * max_tile
    return n_pad, max_tile


def pallas_iou_batched(truths_pad, pl_pack, v0, v1, tn):
    """truths_pad: (B, A_pad, 4); pl_pack: (B, 8, N_pad).
       Returns (B, 2*A_pad, N_pad) fused IoU matrices."""
    b, a_pad, _ = truths_pad.shape
    n_pad = pl_pack.shape[2]
    kern = partial(_iou_decode_kernel, v0=float(v0), v1=float(v1), a_pad=int(a_pad))
    return pl.pallas_call(
        kern,
        grid=(b, n_pad // tn),
        in_specs=[
            pl.BlockSpec((None, a_pad, 4), lambda bb, j: (bb, 0, 0)),
            pl.BlockSpec((None, 8, tn), lambda bb, j: (bb, 0, j)),
        ],
        out_specs=pl.BlockSpec((None, 2 * a_pad, tn), lambda bb, j: (bb, 0, j)),
        out_shape=jax.ShapeDtypeStruct((b, 2 * a_pad, n_pad), jnp.float32),
        compiler_params=pltpu.CompilerParams(
            dimension_semantics=("parallel", "parallel")),
    )(truths_pad, pl_pack)


def pallas_smooth_l1_sum(cnt, p, t):
    rows, cols = p.shape
    return pl.pallas_call(
        _smooth_l1_sum_kernel,
        grid_spec=pltpu.PrefetchScalarGridSpec(
            num_scalar_prefetch=1,
            grid=(1,),
            in_specs=[pl.BlockSpec((rows, cols), lambda i, c: (0, 0)),
                      pl.BlockSpec((rows, cols), lambda i, c: (0, 0))],
            out_specs=pl.BlockSpec((1, 1), lambda i, c: (0, 0)),
        ),
        out_shape=jax.ShapeDtypeStruct((1, 1), jnp.float32),
    )(cnt, p, t)[0, 0]


def pallas_ce_sum(cnt, x, lab):
    c, r = x.shape
    return pl.pallas_call(
        _ce_sum_kernel,
        grid_spec=pltpu.PrefetchScalarGridSpec(
            num_scalar_prefetch=1,
            grid=(1,),
            in_specs=[pl.BlockSpec((c, r), lambda i, cn: (0, 0)),
                      pl.BlockSpec((1, r), lambda i, cn: (0, 0))],
            out_specs=pl.BlockSpec((1, 1), lambda i, cn: (0, 0)),
        ),
        out_shape=jax.ShapeDtypeStruct((1, 1), jnp.float32),
    )(cnt, x, lab)[0, 0]


# ----------------------------------------------------------------------------
# Host-side glue (replicates the PyTorch reference semantics exactly)
# ----------------------------------------------------------------------------
def encode_np(matched, priors, variances):
    g_cxcy = (matched[:, :2] + matched[:, 2:]) / 2.0 - priors[:, :2]
    g_cxcy = g_cxcy / (variances[0] * priors[:, 2:])
    g_wh = (matched[:, 2:] - matched[:, :2]) / priors[:, 2:]
    g_wh = np.log(g_wh) / variances[1]
    return np.concatenate([g_cxcy, g_wh], axis=1).astype(np.float32)


def encode_landm_np(matched, priors, variances):
    m = matched.reshape(matched.shape[0], 5, 2)
    pcx = np.broadcast_to(priors[:, 0:1], (m.shape[0], 5))[..., None]
    pcy = np.broadcast_to(priors[:, 1:2], (m.shape[0], 5))[..., None]
    pw = np.broadcast_to(priors[:, 2:3], (m.shape[0], 5))[..., None]
    ph = np.broadcast_to(priors[:, 3:4], (m.shape[0], 5))[..., None]
    pri = np.concatenate([pcx, pcy, pw, ph], axis=2)
    g = (m[:, :, :2] - pri[:, :, :2]) / (variances[0] * pri[:, :, 2:])
    return g.reshape(g.shape[0], -1).astype(np.float32)


def match_host(p_th, n_th, k_num, truths, priors, variance, labels, landms,
               iou_anchor, iou_predict):
    # TODO(synk): top-k + threshold filtering produces dynamic-length index sets;
    # this data-dependent selection stays on host (numpy) rather than in Pallas.
    num_obj = truths.shape[0]
    num_anchor = priors.shape[0]
    iou_anchor = np.array(iou_anchor, np.float32, copy=True)
    iou_predict = np.array(iou_predict, np.float32, copy=True)

    sum_p_indices = []
    for i in range(num_obj):
        idx_sorted = np.argsort(-iou_anchor[i], kind="stable")[:k_num]
        vals = iou_anchor[i, idx_sorted]
        sel_a = idx_sorted[vals > p_th].astype(np.int64)
        if sel_a.size == 0:
            sel_a = np.array([idx_sorted[0]], dtype=np.int64)
        iou_anchor[:, sel_a] = -1.0
        iou_predict[:, sel_a] = -1.0

        idx_sorted_p = np.argsort(-iou_predict[i], kind="stable")[:k_num]
        vals_p = iou_predict[i, idx_sorted_p]
        sel_p = idx_sorted_p[vals_p > p_th + 0.05].astype(np.int64)
        iou_anchor[:, sel_p] = -1.0
        iou_predict[:, sel_p] = -1.0

        sum_p_indices.append(np.concatenate([sel_a, sel_p]).astype(np.int64))

    iou_all = np.concatenate([iou_anchor, iou_predict], axis=0)
    max_n = iou_all.max(axis=0)
    selected_n_mask = (max_n != -1.0) & (max_n < n_th)

    p_indices = np.concatenate(sum_p_indices, axis=0)
    p_true = np.concatenate(
        [np.full(s.shape, j, np.int64) for j, s in enumerate(sum_p_indices)])

    lab_sel = labels[p_true]
    lm_mask = lab_sel == 1
    p_landm_indices = p_indices[lm_mask]
    p_landm_true = p_true[lm_mask]
    if p_landm_indices.size > 0:
        landm_t = encode_landm_np(landms[p_landm_true], priors[p_landm_indices], variance)
    else:
        landm_t = np.zeros((0, 10), np.float32)

    loc_t = encode_np(truths[p_true], priors[p_indices], variance)

    conf = np.full((num_anchor,), -2.0, np.float32)
    conf[p_indices] = 1.0
    conf[selected_n_mask] = 0.0
    return conf, p_indices, loc_t, p_landm_indices, landm_t


def masked_smooth_l1(pred, tgt):
    n_elems = int(pred.size)
    pad = max(1024, ((n_elems + 1023) // 1024) * 1024)   # multiple of 8*128
    p = np.zeros((pad,), np.float32)
    t = np.zeros((pad,), np.float32)
    p[:n_elems] = np.asarray(pred, np.float32).reshape(-1)
    t[:n_elems] = np.asarray(tgt, np.float32).reshape(-1)
    rows = pad // 128
    cnt = np.array([n_elems], np.int32)
    return pallas_smooth_l1_sum(jnp.asarray(cnt),
                                jnp.asarray(p.reshape(rows, 128)),
                                jnp.asarray(t.reshape(rows, 128)))


def masked_ce_sum(logits, labels, num_classes):
    r = int(logits.shape[0])
    r_pad = max(128, ((r + 127) // 128) * 128)
    x = np.zeros((num_classes, r_pad), np.float32)
    x[:, :r] = np.asarray(logits, np.float32).T
    lab = np.zeros((1, r_pad), np.int32)
    lab[0, :r] = np.asarray(labels, np.int64)
    cnt = np.array([r], np.int32)
    return pallas_ce_sum(jnp.asarray(cnt), jnp.asarray(x), jnp.asarray(lab))


class MultiBoxLossConfig:
    def __init__(self, num_classes, P_Th, N_Th, k_num, neg_pos, variance):
        self.num_classes = num_classes
        self.P_Th = P_Th
        self.N_Th = N_Th
        self.k_num = k_num
        self.negpos_ratio = neg_pos
        self.variance = variance


def multibox_loss_forward(predictions, priors, targets, cfg):
    loc_data, conf_data, landm_data = [np.asarray(x, np.float32) for x in predictions]
    priors = np.asarray(priors, np.float32)
    num = loc_data.shape[0]
    n_anchor = priors.shape[0]

    # ---- Stage 1: one batched Pallas decode+IoU call, single D2H sync. ----
    num_objs = [int(np.asarray(targets[i]).shape[0]) for i in range(num)]
    a_pad = max(8, ((max(num_objs) + 7) // 8) * 8)
    n_pad, tn = _choose_anchor_tile(n_anchor)

    truths_pad = np.zeros((num, a_pad, 4), np.float32)
    pl_pack = np.zeros((num, 8, n_pad), np.float32)
    pl_pack[:, 0:4, :n_anchor] = priors.T[None, :, :]   # priors hoisted out of loop
    for i in range(num):
        t = np.asarray(targets[i], np.float32)
        truths_pad[i, :num_objs[i]] = t[:, :4]
        pl_pack[i, 4:8, :n_anchor] = loc_data[i].T

    iou_dev = pallas_iou_batched(jnp.asarray(truths_pad), jnp.asarray(pl_pack),
                                 cfg.variance[0], cfg.variance[1], tn)
    iou_host = np.asarray(iou_dev)   # single blocking D2H for the whole batch

    # ---- Stage 2: per-image host matching (data-dependent, numpy). ----
    conf_t, p_indices_t, loc_t, p_landm_indices_t, landm_t = [], [], [], [], []
    for idx in range(num):
        t = np.asarray(targets[idx], np.float32)
        truths = t[:, :4]
        labels = t[:, -1]
        landms = t[:, 4:14]
        no = num_objs[idx]
        iou_a = iou_host[idx, :no, :n_anchor]
        iou_p = iou_host[idx, a_pad:a_pad + no, :n_anchor]
        c, pi, lt, pli, lmt = match_host(
            cfg.P_Th, cfg.N_Th, cfg.k_num, truths, priors, cfg.variance,
            labels, landms, iou_a, iou_p)
        conf_t.append(c); p_indices_t.append(pi); loc_t.append(lt)
        p_landm_indices_t.append(pli); landm_t.append(lmt)

    # ---- Stage 3: dispatch loc/landm loss kernels BEFORE the host-side
    #               hard-negative mining (overlap device + host work). ----
    landm_p = np.concatenate(
        [landm_data[i, p_landm_indices_t[i], :] for i in range(num)], axis=0)
    landm_t_all = np.concatenate(landm_t, axis=0)
    landm_t_eye = landm_t_all[:, :6]          # matches the reference slice [:, :6]
    loss_landm = masked_smooth_l1(landm_p, landm_t_eye)

    loc_p = np.concatenate(
        [loc_data[i, p_indices_t[i], :] for i in range(num)], axis=0)
    loc_t_all = np.concatenate(loc_t, axis=0)
    loss_l = masked_smooth_l1(loc_p, loc_t_all)

    # classification loss with online hard-negative mining (host ranking)
    pn_real_all, pn_pred_all = [], []
    for kk in range(num):
        c = conf_t[kk]
        pos_mask = c == 1.0
        my_p_real = np.ones(int(pos_mask.sum()), np.int64)
        my_p_pred = conf_data[kk, pos_mask, :]
        num_positive = my_p_real.size

        neg_mask0 = c == 0.0
        unsure_n_real = np.zeros(int(neg_mask0.sum()), np.int64)
        unsure_n_pred = conf_data[kk, neg_mask0, :]

        # log_sum_exp with GLOBAL max (matches the torch helper exactly)
        x_max = unsure_n_pred.max()
        lse = np.log(np.sum(np.exp(unsure_n_pred - x_max), axis=1, keepdims=True)) + x_max
        loss_c = (lse - unsure_n_pred[np.arange(unsure_n_pred.shape[0]),
                                      unsure_n_real][:, None]).squeeze(1)
        # TODO(synk): descending sort / rank for hard-negative mining is
        # data-dependent ordering; kept on host instead of Pallas.
        loss_idx = np.argsort(-loss_c, kind="stable")
        idx_rank = np.argsort(loss_idx, kind="stable")
        num_n = num_positive * cfg.negpos_ratio
        neg = idx_rank < num_n
        my_n_real = unsure_n_real[neg]
        my_n_pred = unsure_n_pred[neg, :]

        pn_real_all.append(np.concatenate([my_p_real, my_n_real]))
        pn_pred_all.append(np.concatenate([my_p_pred, my_n_pred], axis=0))

    labels_all = np.concatenate(pn_real_all, axis=0).astype(np.int64)
    logits_all = np.concatenate(pn_pred_all, axis=0)
    loss_cls = masked_ce_sum(logits_all, labels_all, cfg.num_classes)

    n = int(np.concatenate(p_indices_t, axis=0).size)
    n1 = int(np.concatenate(p_landm_indices_t, axis=0).size)
    # NOTE: no clamp on n / n1, matching the torch reference exactly
    # (n1 == 0 would produce inf/NaN there as well).
    loss_l = loss_l / n
    loss_cls = loss_cls / n
    loss_landm = loss_landm / n1
    return loss_l, loss_cls, loss_landm


# ----------------------------------------------------------------------------
# Deterministic synthetic example
# ----------------------------------------------------------------------------
def _make_priors():
    xs = (np.arange(8, dtype=np.float32) + 0.5) / 8.0
    pri = []
    for s in (0.15, 0.30):
        for yy in xs:
            for xx in xs:
                pri.append([xx, yy, s, s])
    return np.asarray(pri, np.float32)  # (128, 4) center form


def _make_target_row(box):
    x1, y1, x2, y2 = box
    cx, cy = (x1 + x2) / 2.0, (y1 + y2) / 2.0
    lm = []
    for dx, dy in [(-0.05, -0.05), (0.05, -0.05), (0.0, 0.0), (-0.04, 0.05), (0.04, 0.05)]:
        lm += [cx + dx, cy + dy]
    return list(box) + lm + [1.0]


if __name__ == "__main__":
    batch, n_anchors, num_classes = 2, 128, 2
    cfg = MultiBoxLossConfig(num_classes=num_classes, P_Th=0.35, N_Th=0.35,
                             k_num=7, neg_pos=7, variance=(0.1, 0.2))

    key = jax.random.PRNGKey(0)
    k1, k2, k3 = jax.random.split(key, 3)
    loc_data = 0.2 * jax.random.normal(k1, (batch, n_anchors, 4), jnp.float32)
    conf_data = jax.random.normal(k2, (batch, n_anchors, num_classes), jnp.float32)
    landm_data = 0.2 * jax.random.normal(k3, (batch, n_anchors, 6), jnp.float32)

    priors = _make_priors()
    targets = [
        np.asarray([_make_target_row([0.10, 0.10, 0.40, 0.45]),
                    _make_target_row([0.55, 0.55, 0.85, 0.90]),
                    _make_target_row([0.30, 0.20, 0.55, 0.50])], np.float32),
        np.asarray([_make_target_row([0.15, 0.60, 0.45, 0.95]),
                    _make_target_row([0.60, 0.10, 0.95, 0.40])], np.float32),
    ]

    loss_l, loss_cls, loss_landm = multibox_loss_forward(
        (loc_data, conf_data, landm_data), priors, targets, cfg)
    jax.block_until_ready((loss_l, loss_cls, loss_landm))
    print("KERNEL_OK")
</pallas_src>

<mosaic_0001>
module attributes {stable_mosaic.version = 11 : i64} {
  func.func @_iou_decode_kernel(%arg0: i32, %arg1: i32, %arg2: memref<1x8x4xf32, #tpu.memory_space<vmem>>, %arg3: memref<1x8x128xf32, #tpu.memory_space<vmem>>, %arg4: memref<1x16x128xf32, #tpu.memory_space<vmem>>) attributes {dimension_semantics = [#tpu.dimension_semantics<parallel>, #tpu.dimension_semantics<parallel>], iteration_bounds = array<i64: 2, 1>, scalar_prefetch = 0 : i64, scratch_operands = 0 : i64, tpu.core_type = #tpu.core_type<tc>, window_params = [{transform_indices = @transform_0, window_bounds = array<i64: 1, 8, 4>}, {transform_indices = @transform_1, window_bounds = array<i64: 1, 8, 128>}, {transform_indices = @transform_2, window_bounds = array<i64: 1, 16, 128>}]} {
    %c0 = arith.constant 0 : index
    %c0_0 = arith.constant 0 : index
    %c0_1 = arith.constant 0 : index
    %0 = vector.load %arg3[%c0, %c0_0, %c0_1] : memref<1x8x128xf32, #tpu.memory_space<vmem>>, vector<1x1x128xf32>
    %1 = vector.shape_cast %0 : vector<1x1x128xf32> to vector<1x128xf32>
    %c0_2 = arith.constant 0 : index
    %c1 = arith.constant 1 : index
    %c0_3 = arith.constant 0 : index
    %2 = vector.load %arg3[%c0_2, %c1, %c0_3] : memref<1x8x128xf32, #tpu.memory_space<vmem>>, vector<1x1x128xf32>
    %3 = vector.shape_cast %2 : vector<1x1x128xf32> to vector<1x128xf32>
    %c0_4 = arith.constant 0 : index
    %c2 = arith.constant 2 : index
    %c0_5 = arith.constant 0 : index
    %4 = vector.load %arg3[%c0_4, %c2, %c0_5] : memref<1x8x128xf32, #tpu.memory_space<vmem>>, vector<1x1x128xf32>
    %5 = vector.shape_cast %4 : vector<1x1x128xf32> to vector<1x128xf32>
    %c0_6 = arith.constant 0 : index
    %c3 = arith.constant 3 : index
    %c0_7 = arith.constant 0 : index
    %6 = vector.load %arg3[%c0_6, %c3, %c0_7] : memref<1x8x128xf32, #tpu.memory_space<vmem>>, vector<1x1x128xf32>
    %7 = vector.shape_cast %6 : vector<1x1x128xf32> to vector<1x128xf32>
    %c0_8 = arith.constant 0 : index
    %c4 = arith.constant 4 : index
    %c0_9 = arith.constant 0 : index
    %8 = vector.load %arg3[%c0_8, %c4, %c0_9] : memref<1x8x128xf32, #tpu.memory_space<vmem>>, vector<1x1x128xf32>
    %9 = vector.shape_cast %8 : vector<1x1x128xf32> to vector<1x128xf32>
    %c0_10 = arith.constant 0 : index
    %c5 = arith.constant 5 : index
    %c0_11 = arith.constant 0 : index
    %10 = vector.load %arg3[%c0_10, %c5, %c0_11] : memref<1x8x128xf32, #tpu.memory_space<vmem>>, vector<1x1x128xf32>
    %11 = vector.shape_cast %10 : vector<1x1x128xf32> to vector<1x128xf32>
    %c0_12 = arith.constant 0 : index
    %c6 = arith.constant 6 : index
    %c0_13 = arith.constant 0 : index
    %12 = vector.load %arg3[%c0_12, %c6, %c0_13] : memref<1x8x128xf32, #tpu.memory_space<vmem>>, vector<1x1x128xf32>
    %13 = vector.shape_cast %12 : vector<1x1x128xf32> to vector<1x128xf32>
    %c0_14 = arith.constant 0 : index
    %c7 = arith.constant 7 : index
    %c0_15 = arith.constant 0 : index
    %14 = vector.load %arg3[%c0_14, %c7, %c0_15] : memref<1x8x128xf32, #tpu.memory_space<vmem>>, vector<1x1x128xf32>
    %15 = vector.shape_cast %14 : vector<1x1x128xf32> to vector<1x128xf32>
    %cst = arith.constant 5.000000e-01 : f32
    %16 = vector.broadcast %cst : f32 to vector<1x128xf32>
    %17 = arith.mulf %16, %5 : vector<1x128xf32>
    %18 = arith.subf %1, %17 : vector<1x128xf32>
    %cst_16 = arith.constant 5.000000e-01 : f32
    %19 = vector.broadcast %cst_16 : f32 to vector<1x128xf32>
    %20 = arith.mulf %19, %7 : vector<1x128xf32>
    %21 = arith.subf %3, %20 : vector<1x128xf32>
    %cst_17 = arith.constant 5.000000e-01 : f32
    %22 = vector.broadcast %cst_17 : f32 to vector<1x128xf32>
    %23 = arith.mulf %22, %5 : vector<1x128xf32>
    %24 = arith.addf %1, %23 : vector<1x128xf32>
    %cst_18 = arith.constant 5.000000e-01 : f32
    %25 = vector.broadcast %cst_18 : f32 to vector<1x128xf32>
    %26 = arith.mulf %25, %7 : vector<1x128xf32>
    %27 = arith.addf %3, %26 : vector<1x128xf32>
    %cst_19 = arith.constant 1.000000e-01 : f32
    %28 = vector.broadcast %cst_19 : f32 to vector<1x128xf32>
    %29 = arith.mulf %9, %28 : vector<1x128xf32>
    %30 = arith.mulf %29, %5 : vector<1x128xf32>
    %31 = arith.addf %1, %30 : vector<1x128xf32>
    %cst_20 = arith.constant 1.000000e-01 : f32
    %32 = vector.broadcast %cst_20 : f32 to vector<1x128xf32>
    %33 = arith.mulf %11, %32 : vector<1x128xf32>
    %34 = arith.mulf %33, %7 : vector<1x128xf32>
    %35 = arith.addf %3, %34 : vector<1x128xf32>
    %cst_21 = arith.constant 2.000000e-01 : f32
    %36 = vector.broadcast %cst_21 : f32 to vector<1x128xf32>
    %37 = arith.mulf %13, %36 : vector<1x128xf32>
    %38 = math.exp %37 : vector<1x128xf32>
    %39 = arith.mulf %5, %38 : vector<1x128xf32>
    %cst_22 = arith.constant 2.000000e-01 : f32
    %40 = vector.broadcast %cst_22 : f32 to vector<1x128xf32>
    %41 = arith.mulf %15, %40 : vector<1x128xf32>
    %42 = math.exp %41 : vector<1x128xf32>
    %43 = arith.mulf %7, %42 : vector<1x128xf32>
    %cst_23 = arith.constant 5.000000e-01 : f32
    %44 = vector.broadcast %cst_23 : f32 to vector<1x128xf32>
    %45 = arith.mulf %44, %39 : vector<1x128xf32>
    %46 = arith.subf %31, %45 : vector<1x128xf32>
    %cst_24 = arith.constant 5.000000e-01 : f32
    %47 = vector.broadcast %cst_24 : f32 to vector<1x128xf32>
    %48 = arith.mulf %47, %43 : vector<1x128xf32>
    %49 = arith.subf %35, %48 : vector<1x128xf32>
    %cst_25 = arith.constant 5.000000e-01 : f32
    %50 = vector.broadcast %cst_25 : f32 to vector<1x128xf32>
    %51 = arith.mulf %50, %39 : vector<1x128xf32>
    %52 = arith.addf %31, %51 : vector<1x128xf32>
    %cst_26 = arith.constant 5.000000e-01 : f32
    %53 = vector.broadcast %cst_26 : f32 to vector<1x128xf32>
    %54 = arith.mulf %53, %43 : vector<1x128xf32>
    %55 = arith.addf %35, %54 : vector<1x128xf32>
    %c0_27 = arith.constant 0 : index
    %c0_28 = arith.constant 0 : index
    %c0_29 = arith.constant 0 : index
    %56 = vector.load %arg2[%c0_27, %c0_28, %c0_29] : memref<1x8x4xf32, #tpu.memory_space<vmem>>, vector<1x8x1xf32>
    %57 = vector.shape_cast %56 : vector<1x8x1xf32> to vector<8x1xf32>
    %c0_30 = arith.constant 0 : index
    %c0_31 = arith.constant 0 : index
    %c1_32 = arith.constant 1 : index
    %58 = vector.load %arg2[%c0_30, %c0_31, %c1_32] : memref<1x8x4xf32, #tpu.memory_space<vmem>>, vector<1x8x1xf32>
    %59 = vector.shape_cast %58 : vector<1x8x1xf32> to vector<8x1xf32>
    %c0_33 = arith.constant 0 : index
    %c0_34 = arith.constant 0 : index
    %c2_35 = arith.constant 2 : index
    %60 = vector.load %arg2[%c0_33, %c0_34, %c2_35] : memref<1x8x4xf32, #tpu.memory_space<vmem>>, vector<1x8x1xf32>
    %61 = vector.shape_cast %60 : vector<1x8x1xf32> to vector<8x1xf32>
    %c0_36 = arith.constant 0 : index
    %c0_37 = arith.constant 0 : index
    %c3_38 = arith.constant 3 : index
    %62 = vector.load %arg2[%c0_36, %c0_37, %c3_38] : memref<1x8x4xf32, #tpu.memory_space<vmem>>, vector<1x8x1xf32>
    %63 = vector.shape_cast %62 : vector<1x8x1xf32> to vector<8x1xf32>
    %64 = arith.subf %61, %57 : vector<8x1xf32>
    %65 = arith.subf %63, %59 : vector<8x1xf32>
    %66 = arith.mulf %64, %65 : vector<8x1xf32>
    %67 = vector.broadcast %61 : vector<8x1xf32> to vector<8x128xf32>
    %68 = vector.broadcast %24 : vector<1x128xf32> to vector<8x128xf32>
    %69 = arith.minimumf %67, %68 : vector<8x128xf32>
    %70 = vector.broadcast %57 : vector<8x1xf32> to vector<8x128xf32>
    %71 = vector.broadcast %18 : vector<1x128xf32> to vector<8x128xf32>
    %72 = arith.maximumf %70, %71 : vector<8x128xf32>
    %73 = arith.subf %69, %72 : vector<8x128xf32>
    %cst_39 = arith.constant 0.000000e+00 : f32
    %74 = vector.broadcast %cst_39 : f32 to vector<8x128xf32>
    %75 = arith.maximumf %73, %74 : vector<8x128xf32>
    %76 = vector.broadcast %63 : vector<8x1xf32> to vector<8x128xf32>
    %77 = vector.broadcast %27 : vector<1x128xf32> to vector<8x128xf32>
    %78 = arith.minimumf %76, %77 : vector<8x128xf32>
    %79 = vector.broadcast %59 : vector<8x1xf32> to vector<8x128xf32>
    %80 = vector.broadcast %21 : vector<1x128xf32> to vector<8x128xf32>
    %81 = arith.maximumf %79, %80 : vector<8x128xf32>
    %82 = arith.subf %78, %81 : vector<8x128xf32>
    %cst_40 = arith.constant 0.000000e+00 : f32
    %83 = vector.broadcast %cst_40 : f32 to vector<8x128xf32>
    %84 = arith.maximumf %82, %83 : vector<8x128xf32>
    %85 = arith.mulf %75, %84 : vector<8x128xf32>
    %86 = arith.subf %24, %18 : vector<1x128xf32>
    %87 = arith.subf %27, %21 : vector<1x128xf32>
    %88 = arith.mulf %86, %87 : vector<1x128xf32>
    %89 = vector.broadcast %66 : vector<8x1xf32> to vector<8x128xf32>
    %90 = vector.broadcast %88 : vector<1x128xf32> to vector<8x128xf32>
    %91 = arith.addf %89, %90 : vector<8x128xf32>
    %92 = arith.subf %91, %85 : vector<8x128xf32>
    %93 = arith.divf %85, %92 : vector<8x128xf32>
    %c0_41 = arith.constant 0 : index
    %c0_42 = arith.constant 0 : index
    %c0_43 = arith.constant 0 : index
    %94 = vector.load %arg4[%c0_41, %c0_42, %c0_43] : memref<1x16x128xf32, #tpu.memory_space<vmem>>, vector<1x8x128xf32>
    %95 = vector.shape_cast %94 : vector<1x8x128xf32> to vector<8x128xf32>
    %96 = vector.shape_cast %93 : vector<8x128xf32> to vector<1x8x128xf32>
    tpu.vector_store %arg4[%c0_41, %c0_42, %c0_43], %96 {strides = array<i32>} : memref<1x16x128xf32, #tpu.memory_space<vmem>>, vector<1x8x128xf32>,
    %97 = vector.broadcast %61 : vector<8x1xf32> to vector<8x128xf32>
    %98 = vector.broadcast %52 : vector<1x128xf32> to vector<8x128xf32>
    %99 = arith.minimumf %97, %98 : vector<8x128xf32>
    %100 = vector.broadcast %57 : vector<8x1xf32> to vector<8x128xf32>
    %101 = vector.broadcast %46 : vector<1x128xf32> to vector<8x128xf32>
    %102 = arith.maximumf %100, %101 : vector<8x128xf32>
    %103 = arith.subf %99, %102 : vector<8x128xf32>
    %cst_44 = arith.constant 0.000000e+00 : f32
    %104 = vector.broadcast %cst_44 : f32 to vector<8x128xf32>
    %105 = arith.maximumf %103, %104 : vector<8x128xf32>
    %106 = vector.broadcast %63 : vector<8x1xf32> to vector<8x128xf32>
    %107 = vector.broadcast %55 : vector<1x128xf32> to vector<8x128xf32>
    %108 = arith.minimumf %106, %107 : vector<8x128xf32>
    %109 = vector.broadcast %59 : vector<8x1xf32> to vector<8x128xf32>
    %110 = vector.broadcast %49 : vector<1x128xf32> to vector<8x128xf32>
    %111 = arith.maximumf %109, %110 : vector<8x128xf32>
    %112 = arith.subf %108, %111 : vector<8x128xf32>
    %cst_45 = arith.constant 0.000000e+00 : f32
    %113 = vector.broadcast %cst_45 : f32 to vector<8x128xf32>
    %114 = arith.maximumf %112, %113 : vector<8x128xf32>
    %115 = arith.mulf %105, %114 : vector<8x128xf32>
    %116 = arith.subf %52, %46 : vector<1x128xf32>
    %117 = arith.subf %55, %49 : vector<1x128xf32>
    %118 = arith.mulf %116, %117 : vector<1x128xf32>
    %119 = vector.broadcast %66 : vector<8x1xf32> to vector<8x128xf32>
    %120 = vector.broadcast %118 : vector<1x128xf32> to vector<8x128xf32>
    %121 = arith.addf %119, %120 : vector<8x128xf32>
    %122 = arith.subf %121, %115 : vector<8x128xf32>
    %123 = arith.divf %115, %122 : vector<8x128xf32>
    %c0_46 = arith.constant 0 : index
    %c8 = arith.constant 8 : index
    %c0_47 = arith.constant 0 : index
    %124 = vector.load %arg4[%c0_46, %c8, %c0_47] : memref<1x16x128xf32, #tpu.memory_space<vmem>>, vector<1x8x128xf32>
    %125 = vector.shape_cast %124 : vector<1x8x128xf32> to vector<8x128xf32>
    %126 = vector.shape_cast %123 : vector<8x128xf32> to vector<1x8x128xf32>
    tpu.vector_store %arg4[%c0_46, %c8, %c0_47], %126 {strides = array<i32>} : memref<1x16x128xf32, #tpu.memory_space<vmem>>, vector<1x8x128xf32>,
    return
  }
  func.func @transform_0(%arg0: i32, %arg1: i32) -> (i32, i32, i32) {
    %c0_i32 = arith.constant 0 : i32
    %c0_i32_0 = arith.constant 0 : i32
    %c0_i32_1 = arith.constant 0 : i32
    return %arg0, %c0_i32, %c0_i32_0 : i32, i32, i32
  }
  func.func @transform_1(%arg0: i32, %arg1: i32) -> (i32, i32, i32) {
    %c0_i32 = arith.constant 0 : i32
    %c0_i32_0 = arith.constant 0 : i32
    return %arg0, %c0_i32, %arg1 : i32, i32, i32
  }
  func.func @transform_2(%arg0: i32, %arg1: i32) -> (i32, i32, i32) {
    %c0_i32 = arith.constant 0 : i32
    %c0_i32_0 = arith.constant 0 : i32
    return %arg0, %c0_i32, %arg1 : i32, i32, i32
  }
}

</mosaic_0001>

<bundles_post_ra>
// kernel: tpu_custom_call.1
= control target key start
LH: loop header
LB: loop body
LE: loop exit
PB: predicated region body
PF: predicated region fallthrough
CT: control target
= control target key end

     0   :  { %7 = vsyncpa [#allocation3], 0  ;;  %s733_s0 = inlined_call_operand.vmem [shape: f32[2,8,4], index: 0, kind: input, shape index: {}]   ;;  %s734_s1 = inlined_call_operand.vmem [shape: f32[2,8,128], index: 1, kind: input, shape index: {}]   ;;  %s735_s2 = inlined_call_operand.hbm [shape: f32[2,16,128], index: 2, kind: output, shape index: {}]  }
   0x1   :  { %9 = vsyncpa [#allocation3 + $0x1], 0  ;;  %s616_s9 = smov 0   ;;  %s618_s10 = smov 0  }
   0x2   :  { %s620_s11 = smov 0   ;;  %s622_s12 = smov 0  }
   0x3   :  { %s624_s13 = smov 0   ;;  %s626_s14 = smov 0  }
   0x4 LB: > { %s423_s15 = sadd.s32 4294967295, %s590_s14   ;;  %s424_s16 = sadd.s32 4294967294, %s590_s14   ;;  %s590_s14 = sphi %s626_s14, %s15_s14   ;;  %s586_s13 = sphi %s624_s13, %s742_s13   ;;  %s582_s12 = sphi %s622_s12, %s741_s12   ;;  %s578_s11 = sphi %s620_s11, %s740_s11   ;;  %s574_s10 = sphi %s618_s10, %s739_s10   ;;  %s570_s9 = sphi %s616_s9, %s738_s9  }
   0x5   : > { %s27_s17 = sadd.s32 1, %s586_s13  ;;  %s90_s18 = sadd.s32 1, %s578_s11 }
   0x6   : > { %p29_p0 = scmp.ge.s32.totalorder %s27_s17, 2  ;;  %p100_p1 = scmp.ne.s32.totalorder %s578_s11, %s574_s10 }
   0x7   : > { %p101_p2 = scmp.eq.s32.totalorder %s423_s15, 1  ;;  %p106_p3 = scmp.ne.s32.totalorder %s574_s10, %s570_s9 }
   0x8   : > { %s744_s17 = smov (%p29_p0, %s27_s17), 0  ;;  %p107_p5 = scmp.eq.s32.totalorder %s424_s16, 1 }
   0x9   : > { %p656_p4 = por %p101_p2, %p100_p1  ;;  %s85_s20 = ssub.s32 %s586_s13, %s744_s17 }
   0xa   : > { %p427_p6 = scmp.ge.s32.totalorder %s590_s14, 1  ;;  %p88_p7 = scmp.eq.s32.totalorder %s85_s20, 0 }
   0xb   : > { %p663_p8 = por %p107_p5, %p106_p3  ;;  %p142_p9 = scmp.lt.s32.totalorder %s590_s14, 3 }
   0xc   : > { %s669_s22 = scalar_select %p88_p7, %s578_s11, %s90_s18  }
   0xd   : > { %p143_p10 = pnand %p427_p6, %p142_p9 }
   0xe   : > { %p170_p11 = scmp.lt.s32.totalorder (!%p143_p10), %s582_s12, 1  ;;  %s594_s28 = smov (!%p143_p10), 2  }
   0xf   : > { %146 = sbr.rel (%p143_p10) target bundleno = 418 (0x1a2), region = 28  ;;  %s597_s29 = smov (!%p143_p10), 127  }
  0x10   : > { %s167_s5 = sand.u32 (!%p143_p10), 1, %s574_s10   ;;  %s436_s7 = sshll.u32 (!%p143_p10), %s582_s12, 8 }
  0x11   : > { %s428_s6 = sshll.u32 (!%p143_p10), %s167_s5, 4  ;;  %s684_s20 = scalar_lea.hbm (!%p143_p10), %s735_s2, %s436_s7 }
  0x12   : > { %s169_s8 = scalar_lea.vmem (!%p143_p10), [#allocation2], %s428_s6 }
  0x13   : > { %s336_s15 = sshll.u32 (!%p143_p10), %s169_s8, 4  ;;  %s686_s15 = int_to_ptr.vmem [resolvable:$true] %s336_s15 }
  0x14   : > { %v592_v0 = vmov 2   ;;  %v593_v1 = vmov 3   ;;  %s171_s23 = scalar_select %p170_p11, %s582_s12, 1  ;;  %v595_v3 = vmov 0   ;;  %v596_v4 = vmov 1  }
  0x15   : > { %500 = vset.pattern.permute.xlu1 %v592_v0  ;;  %502 = vset.pattern.permute.xlu0 %v593_v1  ;;  %v230_v23 = vlaneseq  ;;  %s514_s12 = scalar_lea.vmem %s686_s15, 256 }
  0x16   : > { %s429_s24 = sshll.u32 %s171_s23, 3  ;;  %s688_s23 = scalar_lea.sflag [#allocation3], %s167_s5 }
  0x17   : > { %s173_s27 = scalar_lea.vmem %s733_s0, %s429_s24  ;;  %s180_s4 = scalar_lea.vmem %s734_s1, %s429_s24  ;;  %v231_v32 = vshrl.u32 %v230_v23, 7 }
  0x18   : > { %v215_v2 = vld [vmem:[%s173_s27] sm:$0xff]  ;;  %p515_p12 = scmp.ne.s32.totalorder %s686_s15, %s514_s12  ;;  %s598_s24 = smov [#allocation2]  }
  0x19   : > { %217 = vrot.lane.b32.xlu0 %v215_v2, %s594_s28  ;;  %227 = vperm.xlu1 %500, %v215_v2   ;;  %v187_v9 = vld [vmem:[%s180_s4 + $0x6] sm:$0x1]  ;;  %v188_v10 = vld [vmem:[%s180_s4 + $0x7] sm:$0x1]  ;;  %v185_v15 = vld [vmem:[%s180_s4 + $0x4] sm:$0x1] }
  0x1a   : > { %v201_v11 = vmul.f32 0.2, %v187_v9  ;;  %v205_v12 = vmul.f32 0.2, %v188_v10  ;;  %v186_v16 = vld [vmem:[%s180_s4 + $0x5] sm:$0x1]  ;;  %p516_p13 = pnand %p515_p12, %p656_p4 }
  0x1b   : > { %v195_v17 = vmul.f32 0.1, %v185_v15  ;;  %v183_v19 = vld [vmem:[%s180_s4 + $0x2] sm:$0x1]  ;;  %v198_v20 = vmul.f32 0.1, %v186_v16 }
  0x1c   : > { %v202_v13 = vmul.f32 1.442695, %v201_v11  ;;  %v206_v14 = vmul.f32 1.442695, %v205_v12  ;;  %v184_v22 = vld [vmem:[%s180_s4 + $0x3] sm:$0x1]  ;;  %p517_p0 = pneg %p516_p13 }
  0x1d   : > { %501 = vset.pattern.permute.xlu1 %v595_v3  ;;  %v196_v24 = vmul.f32 %v195_v17, %v183_v19  ;;  %v181_v26 = vld [vmem:[%s180_s4] sm:$0x1]  ;;  %v199_v28 = vmul.f32 %v198_v20, %v184_v22  ;;  %v182_v30 = vld [vmem:[%s180_s4 + $0x1] sm:$0x1]  ;;  %v189_v31 = vmul.f32 0.5, %v183_v19  ;;  %v191_v35 = vmul.f32 0.5, %v184_v22 }
  0x1e   : > { %236 = vperm.xlu1 %501, %v215_v2   ;;  %506 = vpow2.f32 %v202_v13  ;;  %v232_v39 = vsub.s32 0, %v231_v32  ;;  %s518_s25 = sshll.u32 %s598_s24, 4  ;;  %s519_s25 = int_to_ptr.vmem [resolvable:$false] %s518_s25 }
  0x1f   : > { %508 = vpow2.f32 %v206_v14  ;;  %v197_v33 = vadd.f32 %v196_v24, %v181_v26  ;;  %v200_v36 = vadd.f32 %v199_v28, %v182_v30  ;;  %v193_v38 = vadd.f32 %v189_v31, %v181_v26  ;;  %s520_s26 = scalar_lea.vmem %s519_s25, 512  ;;  %p521_p1 = scmp.lt.s32.totalorder %s686_s15, %s519_s25 }
  0x20   : > { %v190_v40 = vsub.f32 %v181_v26, %v189_v31  ;;  %v192_v44 = vsub.f32 %v182_v30, %v191_v35  ;;  %v194_v46 = vadd.f32 %v191_v35, %v182_v30  ;;  %p522_p2 = scmp.lt.s32.totalorder %s520_s26, %s514_s12 }
  0x21   : > { %v233_v48 = vrot.slane %v193_v38, %v232_v39 }
  0x22   : > { %503 = vset.pattern.permute.xlu1 %v596_v4  ;;  %v242_v49 = vrot.slane %v190_v40, %v232_v39  ;;  %v262_v52 = vrot.slane %v192_v44, %v232_v39  ;;  %v253_v55 = vrot.slane %v194_v46, %v232_v39  ;;  %v267_v60 = vsub.f32 %v193_v38, %v190_v40  ;;  %p523_p3 = por %p522_p2, %p521_p1 }
  0x23   : > { %256 = vperm.xlu1 %503, %v215_v2   ;;  %v268_v61 = vsub.f32 %v194_v46, %v192_v44 }
  0x24   : > { %p524_p5 = pnand %p523_p3, %p517_p0 }
  0x27   : > { %504 = vset.pattern.permute.xlu1 %v592_v0 }
  0x2b   : > { %v507_v18 = vpop.eup %506 }
  0x2c   : > { %v509_v21 = vpop.eup %508  ;;  %v204_v25 = vmul.f32 %v507_v18, %v183_v19 }
  0x2d   : > { %v208_v29 = vmul.f32 %v509_v21, %v184_v22 }
  0x2e   : > { %v209_v34 = vmul.f32 0.5, %v204_v25 }
  0x2f   : > { %v211_v37 = vmul.f32 0.5, %v208_v29 }
  0x30   : > { %v213_v42 = vadd.f32 %v209_v34, %v197_v33  ;;  %v210_v43 = vsub.f32 %v197_v33, %v209_v34 }
  0x31   : > { %v212_v45 = vsub.f32 %v200_v36, %v211_v37  ;;  %v214_v47 = vadd.f32 %v211_v37, %v200_v36 }
  0x32   : > { %v287_v50 = vrot.slane %v213_v42, %v232_v39  ;;  %v292_v51 = vrot.slane %v210_v43, %v232_v39  ;;  %v309_v1 = vsub.f32 %v213_v42, %v210_v43 }
  0x33   : > { %v304_v53 = vrot.slane %v212_v45, %v232_v39  ;;  %v299_v56 = vrot.slane %v214_v47, %v232_v39 }
  0x8b   : > { %v218_v5 = vpop.permute.xlu0 %217 }
  0x8c   : > { %v220_v6 = vsub.f32 %v215_v2, %v218_v5  ;;  %v310_v5 = vsub.f32 %v214_v47, %v212_v45 }
  0x8e   : > { %222 = vrot.lane.b32.xlu0 %v220_v6, %s597_s29  ;;  %v311_v11 = vmul.f32 %v310_v5, %v309_v1 }
  0x90   : > { %v315_v17 = vrot.slane %v311_v11, %v232_v39 }
  0x92   : > { %247 = vperm.xlu0 %502, %v215_v2  }
  0x94   : > { %v228_v27 = vpop.permute.xlu1 %227 }
  0x95   : > { %v234_v58 = vmin.f32 %v228_v27, %v233_v48  ;;  %v288_v62 = vmin.f32 %v228_v27, %v287_v50 }
  0x96   : > { %505 = vset.pattern.permute.xlu0 %v592_v0 }
  0x99   : > { %v237_v41 = vpop.permute.xlu1 %236 }
  0x9a   : > { %v243_v59 = vmax.f32 %v237_v41, %v242_v49  ;;  %v293_v63 = vmax.f32 %v237_v41, %v292_v51 }
  0x9e   : > { %v257_v54 = vpop.permute.xlu1 %256 }
  0x9f   : > { %v263_v0 = vmax.f32 %v257_v54, %v262_v52  ;;  %v305_v2 = vmax.f32 %v257_v54, %v304_v53 }
 0x100   : > { %v223_v7 = vpop.permute.xlu0 %222 }
 0x101   : > { %v225_v8 = vmul.f32 %v223_v7, %v220_v6  ;;  %v244_v6 = vsub.f32 %v234_v58, %v243_v59  ;;  %v269_v7 = vmul.f32 %v268_v61, %v267_v60 }
 0x103   : > { %272 = vperm.xlu1 %504, %v225_v8   ;;  %v294_v8 = vsub.f32 %v288_v62, %v293_v63  ;;  %v245_v12 = vmax.f32 %v244_v6, 0.0  ;;  %v278_v13 = vrot.slane %v269_v7, %v232_v39 }
 0x105   : > { %v295_v14 = vmax.f32 %v294_v8, 0.0 }
 0x10d   : > { %v248_v57 = vpop.permute.xlu0 %247 }
 0x10e   : > { %v254_v3 = vmin.f32 %v248_v57, %v253_v55  ;;  %v300_v4 = vmin.f32 %v248_v57, %v299_v56 }
 0x110   : > { %v264_v9 = vsub.f32 %v254_v3, %v263_v0  ;;  %v306_v10 = vsub.f32 %v300_v4, %v305_v2 }
 0x112   : > { %v265_v15 = vmax.f32 %v264_v9, 0.0  ;;  %v307_v16 = vmax.f32 %v306_v10, 0.0 }
 0x114   : > { %v266_v19 = vmul.f32 %v265_v15, %v245_v12  ;;  %v308_v21 = vmul.f32 %v307_v16, %v295_v14 }
 0x17e   : > { %v273_v18 = vpop.permute.xlu1 %272 }
 0x17f   : > { %v279_v20 = vadd.f32 %v278_v13, %v273_v18  ;;  %v316_v22 = vadd.f32 %v315_v17, %v273_v18 }
 0x181   : > { %v280_v23 = vsub.f32 %v279_v20, %v266_v19  ;;  %v317_v24 = vsub.f32 %v316_v22, %v308_v21 }
 0x183   : > { %510 = vrcp.f32 %v280_v23 }
 0x184   : > { %512 = vrcp.f32 %v317_v24 }
 0x190   : > { %v511_v25 = vpop.eup %510 }
 0x191   : > { %v513_v26 = vpop.eup %512  ;;  %v282_v27 = vmul.f32 %v511_v25, %v266_v19 }
 0x192   : > { %v319_v28 = vmul.f32 %v513_v26, %v308_v21 }
 0x193   : > { %283 = vst [vmem:[%s169_s8] sm:$0xff] %v282_v27 }
 0x194   : > { %320 = vst [vmem:[%s169_s8 + $0x8] sm:$0xff] %v319_v28 }
 0x195   : > { %527 = shalt.err (!%p524_p5)
}
 0x196   : > { %s528_s27 = scalar_lea.hbm %s684_s20, 256  ;;  %s532_s30 = scalar_lea.hbm %s735_s2, 512 }
 0x197   : > { %p529_p6 = scmp.ne.s32.totalorder %s684_s20, %s528_s27  ;;  %p533_p10 = scmp.lt.s32.totalorder %s684_s20, %s735_s2 }
 0x198   : > { %p534_p11 = scmp.lt.s32.totalorder %s532_s30, %s528_s27 }
 0x199   : > { %p530_p7 = pnand %p529_p6, %p656_p4 }
 0x19a   : > { %p535_p12 = por %p534_p11, %p533_p10 }
 0x19b   : > { %p531_p9 = pneg %p530_p7 }
 0x19d   : > { %p536_p13 = pnand %p535_p12, %p531_p9 }
 0x19f   : > { %539 = shalt.err (!%p536_p13)
}
 0x1a0   : > { %s599_s5 = smov 128   ;;  %s600_s6 = smov 8  }
 0x1a1   : > { %437 = dma.vmem_to_hbm [thread:$0]  (%p656_p4), %s686_s15, 256, %s684_s20, %s688_s23, %s599_s5, %s599_s5, %s600_s6  }
 0x1a2 PF: > { %p443_p0 = scmp.ge.s32.totalorder %s590_s14, 2  ;;  %s351_s7 = sand.u32 1, %s570_s9  }
 0x1a3   : > { %s352_s8 = scalar_lea.sflag [#allocation3], %s351_s7 }
 0x1a4   : > { %p440_p1 = pnand %p443_p0, %p663_p8 }
 0x1a6   : > { %p441_p2 = pneg %p440_p1 }
 0x1a8   : > { %565 = dma.done.wait (%p441_p2), %s352_s8, 256  }
 0x1a9   : > { %567 = vsyncadd (%p441_p2), %s352_s8, 4294967040  ;;  %s15_s14 = sadd.s32 1, %s590_s14   ;;  %s738_s9 = smov %s574_s10 }
 0x1aa   : > { %p12_p3 = scmp.ge.s32.totalorder %s15_s14, 4   ;;  %s739_s10 = smov %s578_s11 }
 0x1ab   : > { %s740_s11 = smov %s669_s22  ;;  %s741_s12 = smov %s586_s13 }
 0x1ac   : > { %s742_s13 = smov %s744_s17  ;;  %14 = sbr.rel (!%p12_p3) target bundleno = 4 (0x4), region = 66 }
 0x1b1   :  { %357 = vsyncpa [#allocation3], 1 }
 0x1b2   :  { %359 = vsyncpa [#allocation3 + $0x1], 1 }

</bundles_post_ra>
